<compile_context>
chip_gen: v6e
topology: v6e:2x2x1
jax: 0.10.0
libtpu: 0.0.40
codegen_flags: <defaults>
</compile_context>

<pallas_src>
import functools
from typing import NamedTuple

import jax
import jax.numpy as jnp
from jax.experimental import pallas as pl
from jax.experimental.pallas import tpu as pltpu


def _rup(x: int, m: int) -> int:
    return ((x + m - 1) // m) * m


class _Layout(NamedTuple):
    in_pad: int    # padded x feature width         (multiple of 32)
    hd_pad: int    # padded heuristic width         (multiple of 32)
    inh_pad: int   # packed input slab width = in_pad + hd_pad
    p0: int        # padded hidden_dims[0]          (multiple of 128)
    pc: int        # padded combined width h1+h1//2 (multiple of 128)
    p2: int        # padded hidden_dims[2]          (multiple of 128)
    po: int        # padded output width            (multiple of 128)
    lane: int      # packed weight buffer lane width = max(p0, pc, p2, po)
    w_rows: int    # packed weight buffer total rows
    o_w1: int      # row offsets of each weight inside the packed buffer
    o_w2: int
    o_wh: int
    o_wc1: int
    o_wc2: int
    out_dim: int


class PreparedParams(NamedTuple):
    wbuf: jax.Array   # (w_rows, lane) bf16 packed weights
    bbuf: jax.Array   # (8, lane) f32 packed biases
    layout: _Layout   # static layout metadata (python ints)


def prepare_params(params, compute_dtype=jnp.bfloat16) -> PreparedParams:
    """One-time packing/padding/casting of the 10 raw (in,out)-layout parameters."""
    (w1, b1, w2, b2, wh, bh, wc1, bc1, wc2, bc2) = params
    in_dim, h0 = w1.shape
    h1 = w2.shape[1]
    heur_dim, half = wh.shape            # half == h1 // 2
    comb = h1 + half
    h2 = wc1.shape[1]
    out_dim = wc2.shape[1]
    assert wc1.shape[0] == comb

    p0 = _rup(h0, 128)
    pc = _rup(comb, 128)
    p2 = _rup(h2, 128)
    po = _rup(out_dim, 128)
    lane = max(p0, pc, p2, po)
    # 32-row granules keep every packed row-slice (8,128)/(16,128)-tile aligned.
    in_pad = _rup(in_dim, 32)
    hd_pad = _rup(heur_dim, 32)
    inh_pad = in_pad + hd_pad

    dt = w1.dtype
    # Stage-1 weight consumes the packed slab [x | heuristic]; heuristic rows are zero.
    w1cat = jnp.zeros((inh_pad, lane), dt).at[:in_dim, :h0].set(w1)
    # Feature layer 2: f1 -> lanes [0, h1).
    w2p = jnp.zeros((p0, lane), dt).at[:h0, :h1].set(w2)
    # Heuristic layer also consumes the slab (x rows zero) and writes lanes [h1, h1+half)
    # of the combined width -> torch.cat becomes disjoint lane placement.
    whcat = jnp.zeros((inh_pad, lane), dt).at[in_pad:in_pad + heur_dim, h1:h1 + half].set(wh)
    # Combination layers.
    wc1p = jnp.zeros((pc, lane), dt).at[:comb, :h2].set(wc1)
    wc2p = jnp.zeros((p2, lane), dt).at[:h2, :out_dim].set(wc2)

    wbuf = jnp.concatenate([w1cat, w2p, whcat, wc1p, wc2p], axis=0).astype(compute_dtype)

    bbuf = jnp.zeros((8, lane), jnp.float32)
    bbuf = bbuf.at[0, :h0].set(b1.astype(jnp.float32))
    bbuf = bbuf.at[1, :h1].set(b2.astype(jnp.float32))              # feature bias ...
    bbuf = bbuf.at[1, h1:h1 + half].set(bh.astype(jnp.float32))     # ... + heuristic bias (disjoint lanes)
    bbuf = bbuf.at[2, :h2].set(bc1.astype(jnp.float32))
    bbuf = bbuf.at[3, :out_dim].set(bc2.astype(jnp.float32))

    o_w1 = 0
    o_w2 = o_w1 + inh_pad
    o_wh = o_w2 + p0
    o_wc1 = o_wh + inh_pad
    o_wc2 = o_wc1 + pc
    w_rows = o_wc2 + p2

    layout = _Layout(in_pad, hd_pad, inh_pad, p0, pc, p2, po, lane, w_rows,
                     o_w1, o_w2, o_wh, o_wc1, o_wc2, out_dim)
    return PreparedParams(wbuf=wbuf, bbuf=bbuf, layout=layout)


def _make_kernel(L: _Layout):
    def kernel(xh_ref, w_ref, b_ref, o_ref):
        bf16, f32 = jnp.bfloat16, jnp.float32
        xh = xh_ref[...]                                   # (TB, inh_pad) bf16 slab

        # feature layer 1 (heuristic rows of w1cat are zero)
        w1 = w_ref[L.o_w1:L.o_w1 + L.inh_pad, :L.p0]
        f = jnp.dot(xh, w1, preferred_element_type=f32) + b_ref[0:1, :L.p0]
        f = jnp.maximum(f, 0.0).astype(bf16)

        # feature layer 2 + heuristic layer + torch.cat, fused:
        # w2p writes lanes [0, h1), whcat writes lanes [h1, h1+h1//2) -- disjoint
        # supports, so one bias-add + ReLU reproduces cat([features, heur_f], 1).
        w2 = w_ref[L.o_w2:L.o_w2 + L.p0, :L.pc]
        wh = w_ref[L.o_wh:L.o_wh + L.inh_pad, :L.pc]
        c = (jnp.dot(f, w2, preferred_element_type=f32)
             + jnp.dot(xh, wh, preferred_element_type=f32)
             + b_ref[1:2, :L.pc])
        c = jnp.maximum(c, 0.0).astype(bf16)

        # combination layer 1 (single MXU matmul on the already-concatenated lanes)
        wc1 = w_ref[L.o_wc1:L.o_wc1 + L.pc, :L.p2]
        g = jnp.dot(c, wc1, preferred_element_type=f32) + b_ref[2:3, :L.p2]
        g = jnp.maximum(g, 0.0).astype(bf16)

        # combination layer 2 (no activation)
        wc2 = w_ref[L.o_wc2:L.o_wc2 + L.p2, :L.po]
        out = jnp.dot(g, wc2, preferred_element_type=f32) + b_ref[3:4, :L.po]
        o_ref[...] = out.astype(o_ref.dtype)               # lane-dense (po is a 128-multiple)

    return kernel


def _choose_tile_b(batch: int) -> int:
    # >=128-row tiles keep the MXU fed / pipelining effective; cap at 512 to bound
    # padding waste. All choices are far below even v7x's 64 MiB VMEM.
    for t in (512, 256, 128):
        if batch % t == 0 or batch >= 4 * t:
            return t
    if batch >= 128:
        return 128
    return _rup(max(batch, 1), 8)


@functools.partial(jax.jit, static_argnames=("layout",))
def _forward(x, heuristic, wbuf, bbuf, *, layout):
    L = layout
    batch = x.shape[0]
    tb = _choose_tile_b(batch)
    b_pad = _rup(batch, tb)

    # Pack [x | heuristic] into one bf16 slab (one pipelined input DMA per tile).
    xp = jnp.pad(x.astype(jnp.bfloat16),
                 ((0, b_pad - batch), (0, L.in_pad - x.shape[1])))
    hp = jnp.pad(heuristic.astype(jnp.bfloat16),
                 ((0, b_pad - batch), (0, L.hd_pad - heuristic.shape[1])))
    xh = jnp.concatenate([xp, hp], axis=1)                 # (b_pad, inh_pad)

    flops = 2 * b_pad * (L.inh_pad * L.p0 + L.p0 * L.pc + L.inh_pad * L.pc
                         + L.pc * L.p2 + L.p2 * L.po)
    bytes_accessed = (b_pad * L.inh_pad * 2            # input slab (bf16)
                      + L.w_rows * L.lane * 2          # packed weights (bf16)
                      + 8 * L.lane * 4                 # packed biases (f32)
                      + b_pad * L.po * 4)              # output (f32)

    out = pl.pallas_call(
        _make_kernel(L),
        out_shape=jax.ShapeDtypeStruct((b_pad, L.po), jnp.float32),
        grid=(b_pad // tb,),
        in_specs=[
            pl.BlockSpec((tb, L.inh_pad), lambda i: (i, 0)),     # input slab tile (pipelined)
            pl.BlockSpec((L.w_rows, L.lane), lambda i: (0, 0)),  # packed weights, VMEM-resident
            pl.BlockSpec((8, L.lane), lambda i: (0, 0)),         # packed biases,  VMEM-resident
        ],
        out_specs=pl.BlockSpec((tb, L.po), lambda i: (i, 0)),    # lane-dense output
        compiler_params=pltpu.CompilerParams(
            dimension_semantics=("parallel",)),
        cost_estimate=pl.CostEstimate(flops=flops, transcendentals=0,
                                      bytes_accessed=bytes_accessed),
    )(xh, wbuf, bbuf)
    return out[:batch, :L.out_dim]


def heuristic_network_forward(x, heuristic, prepared: PreparedParams):
    """x: (B, input_dim), heuristic: (B, heuristic_dim) -> (B, output_dim) float32."""
    return _forward(x, heuristic, prepared.wbuf, prepared.bbuf, layout=prepared.layout)


def init_params(key, input_dim, hidden_dims, output_dim, heuristic_dim):
    """Deterministic init mimicking nn.Linear defaults (uniform +-1/sqrt(fan_in)).
    Weights are stored already transposed to (in, out)."""
    h0, h1, h2 = hidden_dims

    def linear(key, fan_in, fan_out):
        kw, kb = jax.random.split(key)
        bound = 1.0 / jnp.sqrt(fan_in)
        w = jax.random.uniform(kw, (fan_in, fan_out), jnp.float32, -bound, bound)
        b = jax.random.uniform(kb, (fan_out,), jnp.float32, -bound, bound)
        return w, b

    keys = jax.random.split(key, 5)
    w1, b1 = linear(keys[0], input_dim, h0)
    w2, b2 = linear(keys[1], h0, h1)
    wh, bh = linear(keys[2], heuristic_dim, h1 // 2)
    wc1, bc1 = linear(keys[3], h1 + h1 // 2, h2)
    wc2, bc2 = linear(keys[4], h2, output_dim)
    return (w1, b1, w2, b2, wh, bh, wc1, bc1, wc2, bc2)


def reference_forward(x, heuristic, params):
    """Pure-f32 JAX reference of the PyTorch forward."""
    (w1, b1, w2, b2, wh, bh, wc1, bc1, wc2, bc2) = params
    f = jax.nn.relu(x @ w1 + b1)
    f = jax.nn.relu(f @ w2 + b2)
    h = jax.nn.relu(heuristic @ wh + bh)
    c = jnp.concatenate([f, h], axis=1)
    c = jax.nn.relu(c @ wc1 + bc1)
    return c @ wc2 + bc2


def reference_forward_bf16(x, heuristic, params):
    """Reference that mimics the kernel's precision policy (bf16 MXU, f32 accumulate/epilogue)."""
    (w1, b1, w2, b2, wh, bh, wc1, bc1, wc2, bc2) = params
    bf = jnp.bfloat16

    def mm(a, w):
        return jnp.dot(a.astype(bf), w.astype(bf), preferred_element_type=jnp.float32)

    f = jax.nn.relu(mm(x, w1) + b1)
    f = jax.nn.relu(mm(f, w2) + b2)
    h = jax.nn.relu(mm(heuristic, wh) + bh)
    c = jnp.concatenate([f, h], axis=1)
    c = jax.nn.relu(mm(c, wc1) + bc1)
    return mm(c, wc2) + bc2


if __name__ == "__main__":
    input_dim = 32
    hidden_dims = [64, 64, 64]
    output_dim = 4
    heuristic_dim = 5

    key = jax.random.PRNGKey(0)
    k_params, k_x, k_h, k_x2, k_h2 = jax.random.split(key, 5)

    params = init_params(k_params, input_dim, hidden_dims, output_dim, heuristic_dim)
    prepared = prepare_params(params)     # one-time pack/pad/cast

    # small batch (single grid step)
    batch = 8
    x = jax.random.normal(k_x, (batch, input_dim), jnp.float32)
    heuristic = jax.random.uniform(k_h, (batch, heuristic_dim), jnp.float32)
    out = jax.block_until_ready(heuristic_network_forward(x, heuristic, prepared))
    assert out.shape == (batch, output_dim)
    ref_bf16 = reference_forward_bf16(x, heuristic, params)
    assert jnp.allclose(out, ref_bf16, atol=1e-2, rtol=1e-2), "mismatch vs bf16 reference (batch=8)"
    assert jnp.allclose(out, reference_forward(x, heuristic, params), atol=1e-1, rtol=1e-1), \
        "mismatch vs f32 reference (batch=8)"

    # larger, non-tile-multiple batch: exercises the batch grid + padding path
    batch2 = 300
    x2 = jax.random.normal(k_x2, (batch2, input_dim), jnp.float32)
    heuristic2 = jax.random.uniform(k_h2, (batch2, heuristic_dim), jnp.float32)
    out2 = jax.block_until_ready(heuristic_network_forward(x2, heuristic2, prepared))
    assert out2.shape == (batch2, output_dim)
    ref2 = reference_forward_bf16(x2, heuristic2, params)
    assert jnp.allclose(out2, ref2, atol=1e-2, rtol=1e-2), "mismatch vs bf16 reference (batch=300)"

    print("KERNEL_OK")
</pallas_src>

<mosaic_0001>
module attributes {stable_mosaic.version = 11 : i64} {
  func.func @kernel(%arg0: i32, %arg1: memref<8x64xbf16, #tpu.memory_space<vmem>>, %arg2: memref<512x128xbf16, #tpu.memory_space<vmem>>, %arg3: memref<8x128xf32, #tpu.memory_space<vmem>>, %arg4: memref<8x128xf32, #tpu.memory_space<vmem>>) attributes {dimension_semantics = [#tpu.dimension_semantics<parallel>], iteration_bounds = array<i64: 1>, scalar_prefetch = 0 : i64, scratch_operands = 0 : i64, tpu.core_type = #tpu.core_type<tc>, window_params = [{transform_indices = @transform_0, window_bounds = array<i64: 8, 64>}, {pipeline_mode = #tpu.pipeline_mode<synchronous>, transform_indices = @transform_1, window_bounds = array<i64: 512, 128>}, {pipeline_mode = #tpu.pipeline_mode<synchronous>, transform_indices = @transform_2, window_bounds = array<i64: 8, 128>}, {transform_indices = @transform_3, window_bounds = array<i64: 8, 128>}]} {
    %c0 = arith.constant 0 : index
    %c0_0 = arith.constant 0 : index
    %0 = vector.load %arg1[%c0, %c0_0] : memref<8x64xbf16, #tpu.memory_space<vmem>>, vector<8x64xbf16>
    %c0_1 = arith.constant 0 : index
    %c0_2 = arith.constant 0 : index
    %1 = vector.load %arg2[%c0_1, %c0_2] : memref<512x128xbf16, #tpu.memory_space<vmem>>, vector<64x128xbf16>
    %cst = arith.constant dense<0.000000e+00> : vector<8x128xf32>
    %2 = tpu.matmul %0, %1, %cst {dimension_numbers = #tpu.dot_dimension_numbers<[1], [0], [0], [1], [0, 0, 1, 1], [], []>} : vector<8x64xbf16>, vector<64x128xbf16>, vector<8x128xf32> -> vector<8x128xf32>
    %c0_3 = arith.constant 0 : index
    %c0_4 = arith.constant 0 : index
    %3 = vector.load %arg3[%c0_3, %c0_4] : memref<8x128xf32, #tpu.memory_space<vmem>>, vector<1x128xf32>
    %4 = vector.broadcast %3 : vector<1x128xf32> to vector<8x128xf32>
    %5 = arith.addf %2, %4 : vector<8x128xf32>
    %cst_5 = arith.constant 0.000000e+00 : f32
    %6 = vector.broadcast %cst_5 : f32 to vector<8x128xf32>
    %7 = arith.maximumf %5, %6 : vector<8x128xf32>
    %8 = arith.truncf %7 : vector<8x128xf32> to vector<8x128xbf16>
    %c64 = arith.constant 64 : index
    %c0_6 = arith.constant 0 : index
    %9 = vector.load %arg2[%c64, %c0_6] : memref<512x128xbf16, #tpu.memory_space<vmem>>, vector<128x128xbf16>
    %c192 = arith.constant 192 : index
    %c0_7 = arith.constant 0 : index
    %10 = vector.load %arg2[%c192, %c0_7] : memref<512x128xbf16, #tpu.memory_space<vmem>>, vector<64x128xbf16>
    %cst_8 = arith.constant dense<0.000000e+00> : vector<8x128xf32>
    %11 = tpu.matmul %8, %9, %cst_8 {dimension_numbers = #tpu.dot_dimension_numbers<[1], [0], [0], [1], [0, 0, 1, 1], [], []>} : vector<8x128xbf16>, vector<128x128xbf16>, vector<8x128xf32> -> vector<8x128xf32>
    %cst_9 = arith.constant dense<0.000000e+00> : vector<8x128xf32>
    %12 = tpu.matmul %0, %10, %cst_9 {dimension_numbers = #tpu.dot_dimension_numbers<[1], [0], [0], [1], [0, 0, 1, 1], [], []>} : vector<8x64xbf16>, vector<64x128xbf16>, vector<8x128xf32> -> vector<8x128xf32>
    %13 = arith.addf %11, %12 : vector<8x128xf32>
    %c1 = arith.constant 1 : index
    %c0_10 = arith.constant 0 : index
    %14 = vector.load %arg3[%c1, %c0_10] : memref<8x128xf32, #tpu.memory_space<vmem>>, vector<1x128xf32>
    %15 = vector.broadcast %14 : vector<1x128xf32> to vector<8x128xf32>
    %16 = arith.addf %13, %15 : vector<8x128xf32>
    %cst_11 = arith.constant 0.000000e+00 : f32
    %17 = vector.broadcast %cst_11 : f32 to vector<8x128xf32>
    %18 = arith.maximumf %16, %17 : vector<8x128xf32>
    %19 = arith.truncf %18 : vector<8x128xf32> to vector<8x128xbf16>
    %c256 = arith.constant 256 : index
    %c0_12 = arith.constant 0 : index
    %20 = vector.load %arg2[%c256, %c0_12] : memref<512x128xbf16, #tpu.memory_space<vmem>>, vector<128x128xbf16>
    %cst_13 = arith.constant dense<0.000000e+00> : vector<8x128xf32>
    %21 = tpu.matmul %19, %20, %cst_13 {dimension_numbers = #tpu.dot_dimension_numbers<[1], [0], [0], [1], [0, 0, 1, 1], [], []>} : vector<8x128xbf16>, vector<128x128xbf16>, vector<8x128xf32> -> vector<8x128xf32>
    %c2 = arith.constant 2 : index
    %c0_14 = arith.constant 0 : index
    %22 = vector.load %arg3[%c2, %c0_14] : memref<8x128xf32, #tpu.memory_space<vmem>>, vector<1x128xf32>
    %23 = vector.broadcast %22 : vector<1x128xf32> to vector<8x128xf32>
    %24 = arith.addf %21, %23 : vector<8x128xf32>
    %cst_15 = arith.constant 0.000000e+00 : f32
    %25 = vector.broadcast %cst_15 : f32 to vector<8x128xf32>
    %26 = arith.maximumf %24, %25 : vector<8x128xf32>
    %27 = arith.truncf %26 : vector<8x128xf32> to vector<8x128xbf16>
    %c384 = arith.constant 384 : index
    %c0_16 = arith.constant 0 : index
    %28 = vector.load %arg2[%c384, %c0_16] : memref<512x128xbf16, #tpu.memory_space<vmem>>, vector<128x128xbf16>
    %cst_17 = arith.constant dense<0.000000e+00> : vector<8x128xf32>
    %29 = tpu.matmul %27, %28, %cst_17 {dimension_numbers = #tpu.dot_dimension_numbers<[1], [0], [0], [1], [0, 0, 1, 1], [], []>} : vector<8x128xbf16>, vector<128x128xbf16>, vector<8x128xf32> -> vector<8x128xf32>
    %c3 = arith.constant 3 : index
    %c0_18 = arith.constant 0 : index
    %30 = vector.load %arg3[%c3, %c0_18] : memref<8x128xf32, #tpu.memory_space<vmem>>, vector<1x128xf32>
    %31 = vector.broadcast %30 : vector<1x128xf32> to vector<8x128xf32>
    %32 = arith.addf %29, %31 : vector<8x128xf32>
    %c0_19 = arith.constant 0 : index
    %c0_20 = arith.constant 0 : index
    %33 = vector.load %arg4[%c0_19, %c0_20] : memref<8x128xf32, #tpu.memory_space<vmem>>, vector<8x128xf32>
    tpu.vector_store %arg4[%c0_19, %c0_20], %32 {strides = array<i32>} : memref<8x128xf32, #tpu.memory_space<vmem>>, vector<8x128xf32>,
    return
  }
  func.func @transform_0(%arg0: i32) -> (i32, i32) {
    %c0_i32 = arith.constant 0 : i32
    %c0_i32_0 = arith.constant 0 : i32
    return %arg0, %c0_i32 : i32, i32
  }
  func.func @transform_1(%arg0: i32) -> (i32, i32) {
    %c0_i32 = arith.constant 0 : i32
    %c0_i32_0 = arith.constant 0 : i32
    %c0_i32_1 = arith.constant 0 : i32
    return %c0_i32, %c0_i32_0 : i32, i32
  }
  func.func @transform_2(%arg0: i32) -> (i32, i32) {
    %c0_i32 = arith.constant 0 : i32
    %c0_i32_0 = arith.constant 0 : i32
    %c0_i32_1 = arith.constant 0 : i32
    return %c0_i32, %c0_i32_0 : i32, i32
  }
  func.func @transform_3(%arg0: i32) -> (i32, i32) {
    %c0_i32 = arith.constant 0 : i32
    %c0_i32_0 = arith.constant 0 : i32
    return %arg0, %c0_i32 : i32, i32
  }
}

</mosaic_0001>

<bundles_post_ra>
// kernel: _forward.1
= control target key start
LH: loop header
LB: loop body
LE: loop exit
PB: predicated region body
PF: predicated region fallthrough
CT: control target
= control target key end

     0   :  { %8 = vsyncpa [#allocation3], 0  ;;  %s741_s12 = smov [#allocation2]   ;;  %s831_s0 = inlined_call_operand.vmem [shape: bf16[8,64], index: 0, kind: input, shape index: {}]   ;;  %s832_s1 = inlined_call_operand.hbm [shape: bf16[512,128], index: 1, kind: input, shape index: {}]   ;;  %s833_s2 = inlined_call_operand.vmem [shape: f32[8,128], index: 2, kind: input, shape index: {}]   ;;  %s834_s3 = inlined_call_operand.vmem [shape: f32[8,128], index: 3, kind: output, shape index: {}]  }
   0x1   :  { %s16_s13 = sshll.u32 %s741_s12, 4  ;;  %s17_s13 = int_to_ptr.vmem [resolvable:$true] %s16_s13 }
   0x2   :  { %s727_s14 = scalar_lea.vmem %s17_s13, 4096  ;;  %p732_p1 = scmp.lt.s32.totalorder %s17_s13, %s17_s13 }
   0x3   :  { %p728_p0 = scmp.ne.s32.totalorder %s17_s13, %s727_s14  ;;  %p733_p2 = scmp.lt.s32.totalorder %s727_s14, %s727_s14 }
   0x5   :  { %p734_p3 = por %p733_p2, %p732_p1 }
   0x7   :  { %p735_p4 = pnand %p734_p3, %p728_p0 }
   0x9   :  { %738 = shalt.err (!%p735_p4)
}
   0xa   :  { %s742_s15 = smov 64   ;;  %s743_s16 = smov 4  }
   0xb   :  { %22 = dma.hbm_to_vmem [thread:$0]  %s832_s1, 4096, %s17_s13, [#allocation3], %s742_s15, %s742_s15, %s743_s16  }
   0xc   :  { %739 = dma.done.wait [#allocation3], 4096  }
   0xd   :  { %740 = vsyncadd [#allocation3], 4294963200  ;;  %v744_v0 = vmov 0.0   ;;  %vm745_vm0 = vmmov 0   ;;  %v687_v1 = vld [vmem:[#allocation2 + $0x18] sm:$0xff]   ;;  %v688_v2 = vld [vmem:[#allocation2 + $0x10] sm:$0xff]  }
   0xe   :  { %598 = vmatprep.subr.bf16.mxu1 %v744_v0  ;;  %606 = vmatprep.mubr.msk.bf16.mxu1 %vm745_vm0, %v744_v0  ;;  %v691_v3 = vld [vmem:[#allocation2 + $0x58] sm:$0xff]   ;;  %v689_v4 = vld [vmem:[#allocation2 + $0x8] sm:$0xff]   ;;  %v692_v5 = vld [vmem:[#allocation2 + $0x50] sm:$0xff]   ;;  %vm67_vm1 = vcmask 523264  }
   0xf   :  { %622 = vmatprep.subr.bf16.mxu0 %v744_v0  ;;  %638 = vmatprep.mubr.msk.bf16.mxu0 %vm745_vm0, %v744_v0  ;;  %v690_v6 = vld [vmem:[#allocation2] sm:$0xff]   ;;  %v693_v7 = vld [vmem:[#allocation2 + $0x48] sm:$0xff]   ;;  %v694_v9 = vld [vmem:[#allocation2 + $0x78] sm:$0xff]  }
  0x10   :  { %599 = vmatpush3.bf16.msra.mxu1 %v687_v1  ;;  %623 = vmatpush3.bf16.msra.mxu0 %v691_v3  ;;  %v29_v8 = vld [vmem:[%s831_s0] sm:$0xf]  ;;  %v696_v11 = vld [vmem:[#allocation2 + $0x70] sm:$0xff]   ;;  %v697_v12 = vld [vmem:[#allocation2 + $0x38] sm:$0xff]  }
  0x11   :  { %600 = vmatprep.subr.bf16.mxu1 %v744_v0  ;;  %624 = vmatprep.subr.bf16.mxu0 %v744_v0  ;;  %v695_v10 = vld [vmem:[#allocation2 + $0x40] sm:$0xff]   ;;  %v698_v13 = vld [vmem:[#allocation2 + $0x68] sm:$0xff]   ;;  %v699_v14 = vld [vmem:[#allocation2 + $0x30] sm:$0xff]  }
  0x12   :  { %v700_v15 = vld [vmem:[#allocation2 + $0x60] sm:$0xff]   ;;  %v701_v16 = vld [vmem:[#allocation2 + $0x28] sm:$0xff]   ;;  %v703_v18 = vld [vmem:[#allocation2 + $0xb8] sm:$0xff]  }
  0x13   :  { %v702_v17 = vld [vmem:[#allocation2 + $0x20] sm:$0xff]   ;;  %v704_v19 = vld [vmem:[#allocation2 + $0xb0] sm:$0xff]   ;;  %v705_v20 = vld [vmem:[#allocation2 + $0xa8] sm:$0xff]  }
  0x14   :  { %601 = vmatpush3.bf16.msra.mxu1 %v688_v2  ;;  %625 = vmatpush3.bf16.msra.mxu0 %v692_v5  ;;  %v706_v21 = vld [vmem:[#allocation2 + $0xa0] sm:$0xff]   ;;  %v707_v22 = vld [vmem:[#allocation2 + $0x98] sm:$0xff]   ;;  %v708_v23 = vld [vmem:[#allocation2 + $0x90] sm:$0xff]  }
  0x15   :  { %602 = vmatprep.subr.bf16.mxu1 %v744_v0  ;;  %626 = vmatprep.subr.bf16.mxu0 %v744_v0  ;;  %v523_v24 = vld [vmem:[%s833_s2] ss:$0 sm:$0xff]  ;;  %v709_v36 = vld [vmem:[#allocation2 + $0x88] sm:$0xff]   ;;  %v711_v38 = vld [vmem:[#allocation2 + $0xf8] sm:$0xff]  }
  0x16   :  { %v710_v37 = vld [vmem:[#allocation2 + $0x80] sm:$0xff]   ;;  %v712_v39 = vld [vmem:[#allocation2 + $0xf0] sm:$0xff]   ;;  %v713_v40 = vld [vmem:[#allocation2 + $0xe8] sm:$0xff]  }
  0x17   :  { %v714_v41 = vld [vmem:[#allocation2 + $0xe0] sm:$0xff]   ;;  %v715_v42 = vld [vmem:[#allocation2 + $0xd8] sm:$0xff]   ;;  %v716_v43 = vld [vmem:[#allocation2 + $0xd0] sm:$0xff]  }
  0x18   :  { %603 = vmatpush3.bf16.msra.mxu1 %v689_v4  ;;  %627 = vmatpush3.bf16.msra.mxu0 %v693_v7  ;;  %v542_v45 = vld [vmem:[%s833_s2 + $0x1] ss:$0 sm:$0xff]  ;;  %v717_v53 = vld [vmem:[#allocation2 + $0xc8] sm:$0xff]   ;;  %v543_v55 = vld [vmem:[%s833_s2 + $0x2] ss:$0 sm:$0xff] }
  0x19   :  { %604 = vmatprep.subr.bf16.mxu1 %v744_v0  ;;  %628 = vmatprep.subr.bf16.mxu0 %v744_v0  ;;  %v718_v54 = vld [vmem:[#allocation2 + $0xc0] sm:$0xff]  }
  0x1a   :  { %v552_v63 = vld [vmem:[%s833_s2 + $0x3] ss:$0 sm:$0xff] }
  0x1c   :  { %605 = vmatpush3.bf16.msra.mxu1 %v690_v6  ;;  %629 = vmatpush3.bf16.msra.mxu0 %v695_v10 }
  0x1d   :  { %610 = vmatprep.subr.bf16.mxu1 %v744_v0  ;;  %630 = vmatprep.subr.bf16.mxu0 %v744_v0 }
  0x1f   :  { %607 = vmatmul.mubr.msk.bf16.vlgmr.msra.gmra.mxu1 %vm67_vm1, %v29_v8 }
  0x20   :  { %611 = vmatpush3.bf16.msra.mxu1 %v694_v9  ;;  %618 = vmatprep.mubr.msk.bf16.mxu1 %vm745_vm0, %v744_v0 }
  0x21   :  { %612 = vmatprep.subr.bf16.mxu1 %v744_v0  ;;  %631 = vmatpush3.bf16.msra.mxu0 %v697_v12 }
  0x22   :  { %632 = vmatprep.subr.bf16.mxu0 %v744_v0 }
  0x24   :  { %613 = vmatpush3.bf16.msra.mxu1 %v696_v11 }
  0x25   :  { %614 = vmatprep.subr.bf16.mxu1 %v744_v0  ;;  %633 = vmatpush3.bf16.msra.mxu0 %v699_v14 }
  0x26   :  { %634 = vmatprep.subr.bf16.mxu0 %v744_v0 }
  0x28   :  { %615 = vmatpush3.bf16.msra.mxu1 %v698_v13 }
  0x29   :  { %616 = vmatprep.subr.bf16.mxu1 %v744_v0  ;;  %635 = vmatpush3.bf16.msra.mxu0 %v701_v16 }
  0x2a   :  { %636 = vmatprep.subr.bf16.mxu0 %v744_v0 }
  0x2c   :  { %617 = vmatpush3.bf16.msra.mxu1 %v700_v15 }
  0x2d   :  { %642 = vmatprep.subr.bf16.mxu1 %v744_v0  ;;  %637 = vmatpush3.bf16.msra.mxu0 %v702_v17 }
  0x2e   :  { %662 = vmatprep.subr.bf16.mxu0 %v744_v0 }
  0x2f   :  { %619 = vmatmul.mubr.msk.bf16.vlgmr.msra.gmra.mxu1 %vm67_vm1, %v29_v8 }
  0x30   :  { %658 = vmatprep.mubr.msk.bf16.mxu1 %vm745_vm0, %v744_v0  ;;  %643 = vmatpush3.bf16.msra.mxu1 %v703_v18 }
  0x31   :  { %644 = vmatprep.subr.bf16.mxu1 %v744_v0 }
  0x34   :  { %645 = vmatpush3.bf16.msra.mxu1 %v704_v19 }
  0x35   :  { %646 = vmatprep.subr.bf16.mxu1 %v744_v0 }
  0x38   :  { %647 = vmatpush3.bf16.msra.mxu1 %v705_v20 }
  0x39   :  { %648 = vmatprep.subr.bf16.mxu1 %v744_v0 }
  0x3c   :  { %649 = vmatpush3.bf16.msra.mxu1 %v706_v21 }
  0x3d   :  { %650 = vmatprep.subr.bf16.mxu1 %v744_v0 }
  0x40   :  { %651 = vmatpush3.bf16.msra.mxu1 %v707_v22 }
  0x41   :  { %652 = vmatprep.subr.bf16.mxu1 %v744_v0 }
  0x44   :  { %653 = vmatpush3.bf16.msra.mxu1 %v708_v23 }
  0x45   :  { %654 = vmatprep.subr.bf16.mxu1 %v744_v0 }
  0x48   :  { %655 = vmatpush3.bf16.msra.mxu1 %v709_v36 }
  0x49   :  { %656 = vmatprep.subr.bf16.mxu1 %v744_v0 }
  0x4c   :  { %657 = vmatpush3.bf16.msra.mxu1 %v710_v37 }
  0xdf   :  { %v105_v25 = vpop.f32.mrf.mxu1 }
  0xe0   :  { %v106_v26 = vadd.f32 %v523_v24, %v105_v25 }
  0xe1   :  { %v608_v27 = vpop.f32.mrf.mxu1 }
  0xe2   :  { %v111_v28 = vmax.f32 %v106_v26, 0.0 }
  0xe3   :  { %v108_v29 = vpop.f32.mrf.mxu1 }
  0xe4   :  { %v112_v30 = vpack.c.bf16 %v111_v28, %v111_v28 }
  0xe5   :  { %v609_v31 = vpop.f32.mrf.mxu1 }
  0xe6   :  { %639 = vmatmul.mubr.bf16.vlgmr.msra.gmra.mxu0 %v112_v30 }
  0xe7   :  { %678 = vmatprep.mubr.msk.bf16.mxu0 %vm745_vm0, %v744_v0  ;;  %663 = vmatpush3.bf16.msra.mxu0 %v711_v38 }
  0xe8   :  { %664 = vmatprep.subr.bf16.mxu0 %v744_v0 }
  0xeb   :  { %665 = vmatpush3.bf16.msra.mxu0 %v712_v39 }
  0xec   :  { %666 = vmatprep.subr.bf16.mxu0 %v744_v0 }
  0xef   :  { %v195_v32 = vpop.f32.mrf.mxu1  ;;  %667 = vmatpush3.bf16.msra.mxu0 %v713_v40 }
  0xf0   :  { %668 = vmatprep.subr.bf16.mxu0 %v744_v0 }
  0xf1   :  { %v620_v33 = vpop.f32.mrf.mxu1 }
  0xf3   :  { %v198_v34 = vpop.f32.mrf.mxu1  ;;  %669 = vmatpush3.bf16.msra.mxu0 %v714_v41 }
  0xf4   :  { %670 = vmatprep.subr.bf16.mxu0 %v744_v0 }
  0xf5   :  { %v621_v35 = vpop.f32.mrf.mxu1 }
  0xf7   :  { %671 = vmatpush3.bf16.msra.mxu0 %v715_v42 }
  0xf8   :  { %672 = vmatprep.subr.bf16.mxu0 %v744_v0 }
  0xfb   :  { %673 = vmatpush3.bf16.msra.mxu0 %v716_v43 }
  0xfc   :  { %674 = vmatprep.subr.bf16.mxu0 %v744_v0 }
  0xff   :  { %675 = vmatpush3.bf16.msra.mxu0 %v717_v53 }
 0x100   :  { %676 = vmatprep.subr.bf16.mxu0 %v744_v0 }
 0x103   :  { %677 = vmatpush3.bf16.msra.mxu0 %v718_v54 }
 0x1a6   :  { %v283_v44 = vpop.f32.mrf.mxu0 }
 0x1a7   :  { %v284_v46 = vadd.f32 %v283_v44, %v195_v32 }
 0x1a8   :  { %v640_v47 = vpop.f32.mrf.mxu0 }
 0x1a9   :  { %v294_v48 = vadd.f32 %v542_v45, %v284_v46 }
 0x1aa   :  { %v286_v49 = vpop.f32.mrf.mxu0 }
 0x1ab   :  { %v295_v50 = vmax.f32 %v294_v48, 0.0 }
 0x1ac   :  { %v641_v51 = vpop.f32.mrf.mxu0 }
 0x1ad   :  { %v296_v52 = vpack.c.bf16 %v295_v50, %v295_v50 }
 0x1af   :  { %659 = vmatmul.mubr.bf16.vlgmr.msra.gmra.mxu1 %v296_v52 }
 0x26f   :  { %v400_v56 = vpop.f32.mrf.mxu1 }
 0x270   :  { %v401_v57 = vadd.f32 %v543_v55, %v400_v56 }
 0x271   :  { %v660_v58 = vpop.f32.mrf.mxu1 }
 0x272   :  { %v406_v59 = vmax.f32 %v401_v57, 0.0 }
 0x273   :  { %v403_v60 = vpop.f32.mrf.mxu1 }
 0x274   :  { %v407_v61 = vpack.c.bf16 %v406_v59, %v406_v59 }
 0x275   :  { %v661_v62 = vpop.f32.mrf.mxu1 }
 0x276   :  { %679 = vmatmul.mubr.bf16.vlgmr.msra.gmra.mxu0 %v407_v61 }
 0x336   :  { %v511_v1 = vpop.f32.mrf.mxu0 }
 0x337   :  { %v512_v0 = vadd.f32 %v552_v63, %v511_v1 }
 0x338   :  { %v680_v2 = vpop.f32.mrf.mxu0 }
 0x339   :  { %517 = vst [vmem:[%s834_s3] sm:$0xff] %v512_v0 }
 0x33a   :  { %v514_v3 = vpop.f32.mrf.mxu0 }
 0x33c   :  { %v681_v4 = vpop.f32.mrf.mxu0 }
 0x33d   :  { %522 = vsyncpa [#allocation3], 1 }

</bundles_post_ra>
